<compile_context>
chip_gen: v6e
topology: v6e:2x2x1
jax: 0.10.0
libtpu: 0.0.40
codegen_flags: <defaults>
</compile_context>

<pallas_src>
import functools

import jax
import jax.numpy as jnp
from jax import lax
from jax.experimental import pallas as pl
from jax.experimental.pallas import tpu as pltpu

MASK_FILL = -1e9  # matches torch masked_fill(value=-1000000000.0)
VMEM_LIMIT = 48 * 1024 * 1024  # stay under v7x's 64 MiB physical VMEM


# ---------------------------------------------------------------------------
# Kernel 1: K / V projection, tiled over the key/value sequence.
# ---------------------------------------------------------------------------
def _kv_proj_kernel(ek_ref, ev_ref, wk_ref, wv_ref, k_ref, v_ref, *,
                    matmul_dtype):
    ek = ek_ref[...].astype(matmul_dtype)
    ev = ev_ref[...].astype(matmul_dtype)
    k_ref[...] = jnp.dot(ek, wk_ref[...],
                         preferred_element_type=jnp.float32).astype(k_ref.dtype)
    v_ref[...] = jnp.dot(ev, wv_ref[...],
                         preferred_element_type=jnp.float32).astype(v_ref.dtype)


# ---------------------------------------------------------------------------
# Kernel 2: flash-style attention with fused Q projection.
#   grid = (num_q_tiles ["parallel"], num_kv_tiles ["arbitrary"])
# ---------------------------------------------------------------------------
def _flash_attn_kernel(*refs, scale, has_mask, matmul_dtype):
    if has_mask:
        (eq_ref, wq_ref, k_ref, v_ref, mask_ref,
         o_ref, q_sc, m_sc, l_sc, acc_sc) = refs
    else:
        (eq_ref, wq_ref, k_ref, v_ref,
         o_ref, q_sc, m_sc, l_sc, acc_sc) = refs
        mask_ref = None

    ki = pl.program_id(1)

    @pl.when(ki == 0)
    def _init():
        # Q projection: computed once per query tile, kept resident in VMEM.
        q = jnp.dot(eq_ref[...].astype(matmul_dtype), wq_ref[...],
                    preferred_element_type=jnp.float32)
        q_sc[...] = (q * scale).astype(q_sc.dtype)   # fold 1/sqrt(d_k) into q
        m_sc[...] = jnp.full(m_sc.shape, -jnp.inf, m_sc.dtype)
        l_sc[...] = jnp.zeros(l_sc.shape, l_sc.dtype)
        acc_sc[...] = jnp.zeros(acc_sc.shape, acc_sc.dtype)

    # scaled scores for this KV block: (TQ, TKV), f32 accumulation on MXU.
    s = lax.dot_general(q_sc[...], k_ref[...],
                        (((1,), (1,)), ((), ())),
                        preferred_element_type=jnp.float32)
    if has_mask:
        s = jnp.where(mask_ref[...] != 0.0, MASK_FILL, s)

    # online softmax (all in f32)
    m_prev = m_sc[...]
    m_new = jnp.maximum(m_prev, jnp.max(s, axis=1, keepdims=True))
    alpha = jnp.exp(m_prev - m_new)
    p = jnp.exp(s - m_new)
    l_sc[...] = alpha * l_sc[...] + jnp.sum(p, axis=1, keepdims=True)
    acc_sc[...] = alpha * acc_sc[...] + jnp.dot(
        p.astype(matmul_dtype), v_ref[...],
        preferred_element_type=jnp.float32)
    m_sc[...] = m_new

    @pl.when(ki == pl.num_programs(1) - 1)
    def _finalize():
        inv_l = pl.reciprocal(l_sc[...], approx=True)   # EUP, ~free
        o_ref[...] = (acc_sc[...] * inv_l).astype(o_ref.dtype)


# ---------------------------------------------------------------------------
# Wrapper: matches the PyTorch Attention.forward semantics.
#   Weights are given in nn.Linear layout (out_features, in_features).
# ---------------------------------------------------------------------------
def attention(enc_q, enc_k, enc_v, wq, wk, wv, mask=None, *,
              block_q=128, block_kv=128, use_bf16=True):
    sq, d_model = enc_q.shape
    skv = enc_k.shape[0]
    d_k = wq.shape[0]
    d_v = wv.shape[0]
    assert wk.shape[0] == d_k and wq.shape[1] == d_model
    assert enc_v.shape[0] == skv

    block_q = min(block_q, sq)
    block_kv = min(block_kv, skv)
    assert sq % block_q == 0 and skv % block_kv == 0, \
        "sequence lengths must be divisible by the tile sizes"
    num_q_tiles = sq // block_q
    num_kv_tiles = skv // block_kv

    matmul_dtype = jnp.bfloat16 if use_bf16 else jnp.float32
    # Pre-transpose to (in, out) and cast once: halves weight DMA bytes.
    wq_t = wq.T.astype(matmul_dtype)
    wk_t = wk.T.astype(matmul_dtype)
    wv_t = wv.T.astype(matmul_dtype)

    # ---- kernel 1: project K and V (tiled over KV rows) -------------------
    k_proj, v_proj = pl.pallas_call(
        functools.partial(_kv_proj_kernel, matmul_dtype=matmul_dtype),
        out_shape=(jax.ShapeDtypeStruct((skv, d_k), matmul_dtype),
                   jax.ShapeDtypeStruct((skv, d_v), matmul_dtype)),
        grid=(num_kv_tiles,),
        in_specs=[pl.BlockSpec((block_kv, d_model), lambda i: (i, 0)),
                  pl.BlockSpec((block_kv, d_model), lambda i: (i, 0)),
                  pl.BlockSpec((d_model, d_k), lambda i: (0, 0)),
                  pl.BlockSpec((d_model, d_v), lambda i: (0, 0))],
        out_specs=(pl.BlockSpec((block_kv, d_k), lambda i: (i, 0)),
                   pl.BlockSpec((block_kv, d_v), lambda i: (i, 0))),
        compiler_params=pltpu.CompilerParams(
            dimension_semantics=("parallel",),
            vmem_limit_bytes=VMEM_LIMIT),
    )(enc_k, enc_v, wk_t, wv_t)

    # ---- kernel 2: flash attention over (q tiles, kv tiles) ---------------
    scale = 1.0 / (float(d_k) ** 0.5)
    has_mask = mask is not None

    in_specs = [
        pl.BlockSpec((block_q, d_model), lambda qi, ki: (qi, 0)),   # enc_q
        pl.BlockSpec((d_model, d_k), lambda qi, ki: (0, 0)),        # W_q
        pl.BlockSpec((block_kv, d_k), lambda qi, ki: (ki, 0)),      # K
        pl.BlockSpec((block_kv, d_v), lambda qi, ki: (ki, 0)),      # V
    ]
    args = [enc_q, wq_t, k_proj, v_proj]
    if has_mask:
        in_specs.append(pl.BlockSpec((block_q, block_kv),
                                     lambda qi, ki: (qi, ki)))
        args.append(mask.astype(jnp.float32))

    out = pl.pallas_call(
        functools.partial(_flash_attn_kernel, scale=scale,
                          has_mask=has_mask, matmul_dtype=matmul_dtype),
        out_shape=jax.ShapeDtypeStruct((sq, d_v), jnp.float32),
        grid=(num_q_tiles, num_kv_tiles),
        in_specs=in_specs,
        out_specs=pl.BlockSpec((block_q, d_v), lambda qi, ki: (qi, 0)),
        scratch_shapes=[pltpu.VMEM((block_q, d_k), matmul_dtype),   # q (scaled)
                        pltpu.VMEM((block_q, 1), jnp.float32),      # running max
                        pltpu.VMEM((block_q, 1), jnp.float32),      # running sum
                        pltpu.VMEM((block_q, d_v), jnp.float32)],   # accumulator
        compiler_params=pltpu.CompilerParams(
            dimension_semantics=("parallel", "arbitrary"),
            vmem_limit_bytes=VMEM_LIMIT),
    )(*args)
    return out


# ---------------------------------------------------------------------------
# Pure-JAX reference (mirrors the PyTorch forward) for correctness checking.
# ---------------------------------------------------------------------------
def attention_reference(enc_q, enc_k, enc_v, wq, wk, wv, mask=None):
    q = enc_q @ wq.T
    k = enc_k @ wk.T
    v = enc_v @ wv.T
    sims = (q @ k.T) / jnp.sqrt(jnp.float32(k.shape[1]))
    if mask is not None:
        sims = jnp.where(mask, MASK_FILL, sims)
    p = jax.nn.softmax(sims, axis=1)
    return p @ v


if __name__ == "__main__":
    # Small but lane-dense shapes (multiples of (8, 128) per the perf review).
    SEQ_Q, SEQ_KV, D_MODEL, D_K, D_V = 256, 256, 128, 128, 128

    key = jax.random.PRNGKey(0)
    kq, kk, kv, kwq, kwk, kwv, kmask = jax.random.split(key, 7)
    enc_q = jax.random.normal(kq, (SEQ_Q, D_MODEL), jnp.float32)
    enc_k = jax.random.normal(kk, (SEQ_KV, D_MODEL), jnp.float32)
    enc_v = jax.random.normal(kv, (SEQ_KV, D_MODEL), jnp.float32)
    # Weights in PyTorch nn.Linear layout: (out_features, in_features).
    wq = 0.1 * jax.random.normal(kwq, (D_K, D_MODEL), jnp.float32)
    wk = 0.1 * jax.random.normal(kwk, (D_K, D_MODEL), jnp.float32)
    wv = 0.1 * jax.random.normal(kwv, (D_V, D_MODEL), jnp.float32)
    mask = jax.random.uniform(kmask, (SEQ_Q, SEQ_KV)) < 0.2  # True = masked

    # Unmasked path.
    out = attention(enc_q, enc_k, enc_v, wq, wk, wv)
    out = jax.block_until_ready(out)
    ref = attention_reference(enc_q, enc_k, enc_v, wq, wk, wv)
    assert out.shape == (SEQ_Q, D_V)
    assert bool(jnp.allclose(out, ref, atol=3e-2, rtol=3e-2)), \
        "mismatch vs reference (no mask)"

    # Masked path (masked_fill with -1e9, matching torch semantics).
    out_m = attention(enc_q, enc_k, enc_v, wq, wk, wv, mask=mask)
    out_m = jax.block_until_ready(out_m)
    ref_m = attention_reference(enc_q, enc_k, enc_v, wq, wk, wv, mask=mask)
    assert bool(jnp.allclose(out_m, ref_m, atol=3e-2, rtol=3e-2)), \
        "mismatch vs reference (masked)"

    print("KERNEL_OK")
</pallas_src>

<mosaic_0001>
module attributes {stable_mosaic.version = 11 : i64} {
  func.func @_kv_proj_kernel(%arg0: i32, %arg1: memref<128x128xf32, #tpu.memory_space<vmem>>, %arg2: memref<128x128xf32, #tpu.memory_space<vmem>>, %arg3: memref<128x128xbf16, #tpu.memory_space<vmem>>, %arg4: memref<128x128xbf16, #tpu.memory_space<vmem>>, %arg5: memref<128x128xbf16, #tpu.memory_space<vmem>>, %arg6: memref<128x128xbf16, #tpu.memory_space<vmem>>) attributes {dimension_semantics = [#tpu.dimension_semantics<parallel>], iteration_bounds = array<i64: 2>, scalar_prefetch = 0 : i64, scratch_operands = 0 : i64, tpu.core_type = #tpu.core_type<tc>, window_params = [{transform_indices = @transform_0, window_bounds = array<i64: 128, 128>}, {transform_indices = @transform_1, window_bounds = array<i64: 128, 128>}, {pipeline_mode = #tpu.pipeline_mode<synchronous>, transform_indices = @transform_2, window_bounds = array<i64: 128, 128>}, {pipeline_mode = #tpu.pipeline_mode<synchronous>, transform_indices = @transform_3, window_bounds = array<i64: 128, 128>}, {transform_indices = @transform_4, window_bounds = array<i64: 128, 128>}, {transform_indices = @transform_5, window_bounds = array<i64: 128, 128>}]} {
    %c0 = arith.constant 0 : index
    %c0_0 = arith.constant 0 : index
    %0 = vector.load %arg1[%c0, %c0_0] : memref<128x128xf32, #tpu.memory_space<vmem>>, vector<128x128xf32>
    %1 = arith.truncf %0 : vector<128x128xf32> to vector<128x128xbf16>
    %c0_1 = arith.constant 0 : index
    %c0_2 = arith.constant 0 : index
    %2 = vector.load %arg2[%c0_1, %c0_2] : memref<128x128xf32, #tpu.memory_space<vmem>>, vector<128x128xf32>
    %3 = arith.truncf %2 : vector<128x128xf32> to vector<128x128xbf16>
    %c0_3 = arith.constant 0 : index
    %c0_4 = arith.constant 0 : index
    %4 = vector.load %arg3[%c0_3, %c0_4] : memref<128x128xbf16, #tpu.memory_space<vmem>>, vector<128x128xbf16>
    %cst = arith.constant dense<0.000000e+00> : vector<128x128xf32>
    %5 = tpu.matmul %1, %4, %cst {dimension_numbers = #tpu.dot_dimension_numbers<[1], [0], [0], [1], [0, 0, 1, 1], [], []>} : vector<128x128xbf16>, vector<128x128xbf16>, vector<128x128xf32> -> vector<128x128xf32>
    %6 = arith.truncf %5 : vector<128x128xf32> to vector<128x128xbf16>
    %c0_5 = arith.constant 0 : index
    %c0_6 = arith.constant 0 : index
    %7 = vector.load %arg5[%c0_5, %c0_6] : memref<128x128xbf16, #tpu.memory_space<vmem>>, vector<128x128xbf16>
    tpu.vector_store %arg5[%c0_5, %c0_6], %6 {strides = array<i32>} : memref<128x128xbf16, #tpu.memory_space<vmem>>, vector<128x128xbf16>,
    %c0_7 = arith.constant 0 : index
    %c0_8 = arith.constant 0 : index
    %8 = vector.load %arg4[%c0_7, %c0_8] : memref<128x128xbf16, #tpu.memory_space<vmem>>, vector<128x128xbf16>
    %cst_9 = arith.constant dense<0.000000e+00> : vector<128x128xf32>
    %9 = tpu.matmul %3, %8, %cst_9 {dimension_numbers = #tpu.dot_dimension_numbers<[1], [0], [0], [1], [0, 0, 1, 1], [], []>} : vector<128x128xbf16>, vector<128x128xbf16>, vector<128x128xf32> -> vector<128x128xf32>
    %10 = arith.truncf %9 : vector<128x128xf32> to vector<128x128xbf16>
    %c0_10 = arith.constant 0 : index
    %c0_11 = arith.constant 0 : index
    %11 = vector.load %arg6[%c0_10, %c0_11] : memref<128x128xbf16, #tpu.memory_space<vmem>>, vector<128x128xbf16>
    tpu.vector_store %arg6[%c0_10, %c0_11], %10 {strides = array<i32>} : memref<128x128xbf16, #tpu.memory_space<vmem>>, vector<128x128xbf16>,
    return
  }
  func.func @transform_0(%arg0: i32) -> (i32, i32) {
    %c0_i32 = arith.constant 0 : i32
    %c0_i32_0 = arith.constant 0 : i32
    return %arg0, %c0_i32 : i32, i32
  }
  func.func @transform_1(%arg0: i32) -> (i32, i32) {
    %c0_i32 = arith.constant 0 : i32
    %c0_i32_0 = arith.constant 0 : i32
    return %arg0, %c0_i32 : i32, i32
  }
  func.func @transform_2(%arg0: i32) -> (i32, i32) {
    %c0_i32 = arith.constant 0 : i32
    %c0_i32_0 = arith.constant 0 : i32
    %c0_i32_1 = arith.constant 0 : i32
    return %c0_i32, %c0_i32_0 : i32, i32
  }
  func.func @transform_3(%arg0: i32) -> (i32, i32) {
    %c0_i32 = arith.constant 0 : i32
    %c0_i32_0 = arith.constant 0 : i32
    %c0_i32_1 = arith.constant 0 : i32
    return %c0_i32, %c0_i32_0 : i32, i32
  }
  func.func @transform_4(%arg0: i32) -> (i32, i32) {
    %c0_i32 = arith.constant 0 : i32
    %c0_i32_0 = arith.constant 0 : i32
    return %arg0, %c0_i32 : i32, i32
  }
  func.func @transform_5(%arg0: i32) -> (i32, i32) {
    %c0_i32 = arith.constant 0 : i32
    %c0_i32_0 = arith.constant 0 : i32
    return %arg0, %c0_i32 : i32, i32
  }
}

</mosaic_0001>

<bundles_post_ra>
// kernel: tpu_custom_call.1
= control target key start
LH: loop header
LB: loop body
LE: loop exit
PB: predicated region body
PF: predicated region fallthrough
CT: control target
= control target key end

     0   :  { %s2037_s0 = inlined_call_operand.hbm [shape: f32[256,128], index: 0, kind: input, shape index: {}]   ;;  %s2038_s1 = inlined_call_operand.hbm [shape: f32[256,128], index: 1, kind: input, shape index: {}]   ;;  %s2039_s2 = inlined_call_operand.hbm [shape: bf16[128,128], index: 2, kind: input, shape index: {}]   ;;  %s2040_s3 = inlined_call_operand.hbm [shape: bf16[128,128], index: 3, kind: input, shape index: {}]   ;;  %s2041_s4 = inlined_call_operand.hbm [shape: bf16[256,128], index: 4, kind: output, shape index: {0}]   ;;  %s2042_s5 = inlined_call_operand.hbm [shape: bf16[256,128], index: 5, kind: output, shape index: {1}]  }
   0x1   :  { %2046 = sst [smem:[#allocation19_spill]] %s2037_s0 }
   0x2   :  { %2047 = sst [smem:[#allocation20_spill]] %s2039_s2 }
   0x3   :  { %11 = vsyncpa [#allocation3], 0 }
   0x4   :  { %13 = vsyncpa [#allocation3 + $0x1], 0 }
   0x5   :  { %14 = vsyncpa [#allocation6], 0 }
   0x6   :  { %16 = vsyncpa [#allocation6 + $0x1], 0 }
   0x7   :  { %17 = vsyncpa [#allocation9], 0 }
   0x8   :  { %18 = vsyncpa [#allocation4], 0 }
   0x9   :  { %20 = vsyncpa [#allocation4 + $0x1], 0 }
   0xa   :  { %21 = vsyncpa [#allocation12], 0 }
   0xb   :  { %23 = vsyncpa [#allocation12 + $0x1], 0  ;;  %s1697_s18 = smov 0   ;;  %s1699_s19 = smov 0  }
   0xc   :  { %s1701_s20 = smov 0   ;;  %s1703_s21 = smov 0  }
   0xd LB: > { %s1718_s22 = sadd.s32 4294967295, %s1653_s21   ;;  %s1040_s23 = sadd.s32 4294967294, %s1653_s21   ;;  %s1653_s21 = sphi %s1703_s21, %s2068_s21   ;;  %s1649_s20 = sphi %s1701_s20, %s2067_s20   ;;  %s1645_s19 = sphi %s1699_s19, %s2066_s19   ;;  %s1641_s18 = sphi %s1697_s18, %s2065_s18  }
   0xe   : > { %p49_p0 = scmp.ne.s32.totalorder %s1645_s19, %s1641_s18  ;;  %p2043_p1 = scmp.eq.s32.totalorder %s1718_s22, 0 }
   0xf   : > { %p147_p3 = scmp.eq.s32.totalorder %s1040_s23, 1  ;;  %p1041_p5 = scmp.ge.s32.totalorder %s1653_s21, 1 }
  0x10   : > { %p1727_p4 = por %p2043_p1, %p49_p0  ;;  %p180_p7 = scmp.lt.s32.totalorder %s1653_s21, 3 }
  0x11   : > { %p1732_p6 = por %p147_p3, %p49_p0  ;;  %s1655_s27 = smov [#allocation7]  }
  0x12   : > { %s2048_s24 = scalar_select %p1727_p4, 1, 0 }
  0x13   : > { %s2049_s25 = scalar_select %p1732_p6, 1, 0 }
  0x14   : > { %p1737_p8 = pnand %p1041_p5, %p180_p7  ;;  %s192_s28 = sshll.u32 %s1655_s27, 4  ;;  %s193_s28 = int_to_ptr.vmem [resolvable:$true] %s192_s28 }
  0x15   : > { %s1656_s30 = smov [#allocation8]   ;;  %s1450_s7 = scalar_lea.vmem %s193_s28, 1024 }
  0x16   : > { %p1356_p9 = pneg %p1737_p8  ;;  %s205_s6 = sshll.u32 %s1656_s30, 4  ;;  %s206_s6 = int_to_ptr.vmem [resolvable:$true] %s205_s6 }
  0x17   : > { %p1451_p13 = scmp.ne.s32.totalorder %s193_s28, %s1450_s7  ;;  %p1458_p5 = scmp.lt.s32.totalorder %s193_s28, %s193_s28 }
  0x18   : > { %p1746_p11 = pnand %p1356_p9, %p2043_p1  ;;  %p1459_p7 = scmp.lt.s32.totalorder %s1450_s7, %s1450_s7 }
  0x1a   : > { %p1441_p12 = pneg %p1746_p11  ;;  %p1460_p10 = por %p1459_p7, %p1458_p5 }
  0x1c   : > { %p1453_p0 = pnand %p1451_p13, %p1441_p12 }
  0x1e   : > { %p1454_p3 = pneg %p1453_p0 }
  0x20   : > { %p1461_p9 = pnand %p1460_p10, %p1454_p3 }
  0x22   : > { %1464 = shalt.err (!%p1461_p9)
}
  0x23   : > { %s1657_s8 = smov 64   ;;  %s1658_s9 = smov 4  }
  0x24   : > { %s2052_s2 = sld [smem:[#allocation20_spill]]  ;;  %s1476_s12 = scalar_lea.vmem %s206_s6, 1024 }
  0x25   : > { %p1477_p1 = scmp.ne.s32.totalorder %s206_s6, %s1476_s12  ;;  %p1484_p2 = scmp.lt.s32.totalorder %s206_s6, %s206_s6 }
  0x26   : > { %p1485_p6 = scmp.lt.s32.totalorder %s1476_s12, %s1476_s12 }
  0x27   : > { %p1479_p13 = pnand %p1477_p1, %p1441_p12 }
  0x28   : > { %p1486_p5 = por %p1485_p6, %p1484_p2 }
  0x29   : > { %p1480_p0 = pneg %p1479_p13 }
  0x2a   : > { %1359 = dma.hbm_to_vmem [thread:$0]  (!%p1746_p11), %s2052_s2, 1024, %s193_s28, [#allocation6], %s1657_s8, %s1657_s8, %s1658_s9  }
  0x2b   : > { %p1487_p10 = pnand %p1486_p5, %p1480_p0 }
  0x2d   : > { %1490 = shalt.err (!%p1487_p10)
}
  0x2e   : > { %1362 = dma.hbm_to_vmem [thread:$0]  (!%p1746_p11), %s2040_s3, 1024, %s206_s6, [#allocation9], %s1657_s8, %s1657_s8, %s1658_s9  }
  0x2f   : > { %s1769_s15 = sadd.s32 1, %s1653_s21   ;;  %s36_s16 = sadd.s32 1, %s1649_s20 }
  0x30   : > { %s33_s17 = ssub.s32 %s1653_s21, %s1769_s15  ;;  %p43_p1 = scmp.ne.s32.totalorder %s1649_s20, %s1645_s19 }
  0x31   : > { %p34_p2 = scmp.eq.s32.totalorder %s33_s17, 0  ;;  %p44_p6 = scmp.eq.s32.totalorder %s1653_s21, 0 }
  0x32   : > { %p2053_p12 = scmp.eq.s32.totalorder %s1718_s22, 1  ;;  %p1379_p7 = scmp.lt.s32.totalorder %s1653_s21, 2 }
  0x33   : > { %s1785_s27 = scalar_select %p34_p2, %s1649_s20, %s36_s16  }
  0x34   : > { %p1779_p3 = por %p2053_p12, %p43_p1  ;;  %p45_p9 = por %p44_p6, %p43_p1 }
  0x35   : > { %s219_s28 = sand.u32 1, %s1649_s20   ;;  %s1114_s30 = sshll.u32 %s1653_s21, 11 }
  0x36   : > { %s2054_s23 = scalar_select %p1779_p3, 1, 0 }
  0x37   : > { %s1788_s29 = sshll.u32 %s219_s28, 7  ;;  %s2055_s0 = sld [smem:[#allocation19_spill]] }
  0x38   : > { %s223_s9 = scalar_lea.vmem [#allocation2], %s1788_s29  ;;  %p1801_p11 = pnand %p1379_p7, %p45_p9 }
  0x39   : > { %s230_s10 = sshll.u32 %s223_s9, 4  ;;  %s1805_s12 = scalar_lea.sflag [#allocation3], %s219_s28  ;;  %s1799_s10 = int_to_ptr.vmem [resolvable:$true] %s230_s10 }
  0x3a   : > { %p1493_p0 = pneg %p1801_p11 }
  0x3d   : > { %s1796_s8 = scalar_lea.hbm %s2055_s0, %s1114_s30  ;;  %s1496_s17 = scalar_lea.hbm %s2055_s0, 4096 }
  0x3e   : > { %s1491_s13 = scalar_lea.hbm %s1796_s8, 2048  ;;  %p1497_p1 = scmp.lt.s32.totalorder %s1796_s8, %s2055_s0 }
  0x3f   : > { %p1492_p13 = scmp.ne.s32.totalorder %s1796_s8, %s1491_s13  ;;  %p1498_p2 = scmp.lt.s32.totalorder %s1496_s17, %s1491_s13 }
  0x41   : > { %p1494_p5 = pnand %p1493_p0, %p1492_p13  ;;  %p1499_p6 = por %p1498_p2, %p1497_p1 }
  0x43   : > { %p1495_p10 = pneg %p1494_p5 }
  0x45   : > { %p1500_p12 = pnand %p1499_p6, %p1495_p10 }
  0x47   : > { %1503 = shalt.err (!%p1500_p12)
}
  0x48   : > { %s1504_s28 = scalar_lea.vmem %s1799_s10, 2048  ;;  %s1659_s9 = smov [#allocation2]  }
  0x49   : > { %p1505_p7 = scmp.ne.s32.totalorder %s1799_s10, %s1504_s28  ;;  %s1509_s14 = sshll.u32 %s1659_s9, 4  ;;  %s1510_s14 = int_to_ptr.vmem [resolvable:$false] %s1509_s14 }
  0x4a   : > { %s1511_s16 = scalar_lea.vmem %s1510_s14, 4096  ;;  %p1512_p5 = scmp.lt.s32.totalorder %s1799_s10, %s1510_s14 }
  0x4b   : > { %p1507_p9 = pnand %p1505_p7, %p1493_p0  ;;  %p1513_p3 = scmp.lt.s32.totalorder %s1511_s16, %s1504_s28 }
  0x4d   : > { %p1508_p13 = pneg %p1507_p9  ;;  %p1514_p4 = por %p1513_p3, %p1512_p5 }
  0x4f   : > { %p1515_p1 = pnand %p1514_p4, %p1508_p13 }
  0x51   : > { %1518 = shalt.err (!%p1515_p1)
}
  0x52   : > { %s1660_s13 = smov 128   ;;  %s1661_s17 = smov 8  }
  0x53   : > { %1366 = dma.hbm_to_vmem [thread:$0]  (!%p1801_p11), %s1796_s8, 2048, %s1799_s10, %s1805_s12, %s1660_s13, %s1660_s13, %s1661_s17  }
  0x54   : > { %s1840_s28 = scalar_lea.hbm %s2038_s1, %s1114_s30  ;;  %s244_s9 = scalar_lea.vmem [#allocation5], %s1788_s29 }
  0x55   : > { %s251_s14 = sshll.u32 %s244_s9, 4  ;;  %s240_s16 = sand.u32 1, %s1653_s21   ;;  %s1843_s14 = int_to_ptr.vmem [resolvable:$true] %s251_s14 }
  0x56   : > { %s241_s0 = scalar_lea.sflag [#allocation6], %s240_s16  ;;  %s1519_s2 = scalar_lea.hbm %s1840_s28, 2048 }
  0x57   : > { %p1520_p4 = scmp.ne.s32.totalorder %s1840_s28, %s1519_s2  ;;  %s1524_s30 = scalar_lea.hbm %s2038_s1, 4096 }
  0x58   : > { %p1525_p2 = scmp.lt.s32.totalorder %s1840_s28, %s2038_s1  ;;  %p1526_p6 = scmp.lt.s32.totalorder %s1524_s30, %s1519_s2 }
  0x59   : > { %p1522_p3 = pnand %p1520_p4, %p1493_p0 }
  0x5a   : > { %p1527_p12 = por %p1526_p6, %p1525_p2 }
  0x5b   : > { %p1523_p10 = pneg %p1522_p3 }
  0x5d   : > { %p1528_p7 = pnand %p1527_p12, %p1523_p10 }
  0x5f   : > { %1531 = shalt.err (!%p1528_p7)
}
  0x60   : > { %s1532_s29 = scalar_lea.vmem %s1843_s14, 2048  ;;  %s1662_s7 = smov [#allocation5]  }
  0x61   : > { %p1533_p9 = scmp.ne.s32.totalorder %s1843_s14, %s1532_s29  ;;  %s1537_s9 = sshll.u32 %s1662_s7, 4  ;;  %s1538_s9 = int_to_ptr.vmem [resolvable:$false] %s1537_s9 }
  0x62   : > { %s1539_s16 = scalar_lea.vmem %s1538_s9, 4096  ;;  %p1540_p1 = scmp.lt.s32.totalorder %s1843_s14, %s1538_s9 }
  0x63   : > { %p1535_p13 = pnand %p1533_p9, %p1493_p0  ;;  %p1541_p4 = scmp.lt.s32.totalorder %s1539_s16, %s1532_s29 }
  0x65   : > { %p1536_p5 = pneg %p1535_p13  ;;  %p1542_p3 = por %p1541_p4, %p1540_p1 }
  0x67   : > { %p1543_p2 = pnand %p1542_p3, %p1536_p5 }
  0x69   : > { %1546 = shalt.err (!%p1543_p2)
}
  0x6a   : > { %1369 = dma.hbm_to_vmem [thread:$0]  (!%p1801_p11), %s1840_s28, 2048, %s1843_s14, %s241_s0, %s1660_s13, %s1660_s13, %s1661_s17  }
  0x6b   : > { %263 = sbr.rel (%p1737_p8) target bundleno = 417 (0x1a1), region = 36  ;;  %s1874_s2 = sand.u32 (!%p1737_p8), 1, %s1645_s19  }
  0x6c   : > { %s1052_s8 = sshll.u32 (!%p1737_p8), %s1874_s2, 7  ;;  %s266_s10 = scalar_lea.sflag (!%p1737_p8), [#allocation3], %s1874_s2 }
  0x6d   : > { %s1878_s30 = scalar_lea.vmem (!%p1737_p8), [#allocation2], %s1052_s8  ;;  %p2057_p0 = scmp.ne.s32.totalorder (!%p1737_p8), %s2048_s24, 0 }
  0x70   : > { %1616 = dma.done.wait (%p2057_p0), %s266_s10, 2048  }
  0x71   : > { %1618 = vsyncadd (%p2057_p0), %s266_s10, 4294965248  ;;  %s274_s0 = sand.u32 1, %s1718_s22   ;;  %s1885_s11 = scalar_lea.vmem [#allocation5], %s1052_s8 }
  0x72   : > { %s275_s26 = scalar_lea.sflag [#allocation6], %s274_s0 }
  0x73   : > { %1620 = dma.done.wait (%p2057_p0), %s275_s26, 2048  }
  0x74   : > { %1622 = vsyncadd (%p2057_p0), %s275_s26, 4294965248  ;;  %p2058_p8 = scmp.eq.s32.totalorder %s1718_s22, 0 }
  0x76   : > { %1624 = dma.done.wait (%p2058_p8), [#allocation6], 1024   ;;  %p2059_p11 = pmov %p2058_p8 }
  0x77   : > { %p2060_p10 = pmov %p2058_p8 }
  0x78   : > { %1626 = vsyncadd (%p2059_p11), [#allocation6], 4294966272 }
  0x79   : > { %1628 = dma.done.wait (%p2060_p10), [#allocation9], 1024   ;;  %p2061_p6 = pmov %p2058_p8 }
  0x7a   : > { %v1423_v0 = vld [vmem:[#allocation7 + $0x38] sm:$0xff]   ;;  %v1425_v2 = vld [vmem:[#allocation7 + $0x30] sm:$0xff]   ;;  %v1427_v4 = vld [vmem:[#allocation7 + $0x28] sm:$0xff]   ;;  %s1056_s24 = sshll.u32 %s1874_s2, 6  ;;  %s1148_s12 = sshll.u32 %s1718_s22, 10 }
  0x7b   : > { %1630 = vsyncadd (%p2061_p6), [#allocation9], 4294966272  ;;  %v1424_v1 = vld [vmem:[#allocation8 + $0x38] sm:$0xff]   ;;  %1276 = vmatprep.subr.bf16.mxu0 %v1423_v0  ;;  %v1426_v3 = vld [vmem:[#allocation8 + $0x30] sm:$0xff]   ;;  %s1932_s13 = scalar_lea.vmem [#allocation10], %s1056_s24  ;;  %s1935_s17 = scalar_lea.vmem [#allocation11], %s1056_s24 }
  0x7c   : > { %1308 = vmatprep.subr.bf16.mxu1 %v1424_v1  ;;  %1277 = vmatpush3.bf16.msra.mxu0 %v1423_v0  ;;  %v1428_v5 = vld [vmem:[#allocation8 + $0x28] sm:$0xff]   ;;  %v1429_v6 = vld [vmem:[#allocation7 + $0x20] sm:$0xff]   ;;  %v1431_v8 = vld [vmem:[#allocation7 + $0x18] sm:$0xff]   ;;  %s877_s28 = sshll.u32 %s1932_s13, 4  ;;  %s893_s14 = sshll.u32 %s1935_s17, 4  ;;  %s1951_s28 = int_to_ptr.vmem [resolvable:$true] %s877_s28  ;;  %s1953_s14 = int_to_ptr.vmem [resolvable:$true] %s893_s14 }
  0x7d   : > { %1309 = vmatpush3.bf16.msra.mxu1 %v1424_v1  ;;  %1278 = vmatprep.subr.bf16.mxu0 %v1425_v2  ;;  %v1430_v7 = vld [vmem:[#allocation8 + $0x20] sm:$0xff]   ;;  %v1432_v9 = vld [vmem:[#allocation8 + $0x18] sm:$0xff]   ;;  %v1433_v10 = vld [vmem:[#allocation7 + $0x10] sm:$0xff]   ;;  %s1958_s7 = scalar_lea.hbm %s2041_s4, %s1148_s12  ;;  %s1965_s16 = scalar_lea.hbm %s2042_s5, %s1148_s12 }
  0x7e   : > { %1310 = vmatprep.subr.bf16.mxu1 %v1426_v3  ;;  %v328_v11 = vld [vmem:[%s1878_s30] sm:$0xff]  ;;  %v329_v12 = vld [vmem:[%s1878_s30 + $0x8] sm:$0xff]  ;;  %v1434_v14 = vld [vmem:[#allocation8 + $0x10] sm:$0xff]   ;;  %s859_s8 = scalar_lea.sflag [#allocation4], %s1874_s2  ;;  %s1547_s10 = scalar_lea.vmem %s1951_s28, 1024 }
  0x7f   : > { %v352_v13 = vld [vmem:[%s1885_s11] sm:$0xff]  ;;  %v344_v15 = vpack.c.bf16 %v329_v12, %v328_v11  ;;  %v353_v16 = vld [vmem:[%s1885_s11 + $0x8] sm:$0xff]  ;;  %v330_v22 = vld [vmem:[%s1878_s30 + $0x10] sm:$0xff]  ;;  %p1548_p12 = scmp.ne.s32.totalorder %s1951_s28, %s1547_s10  ;;  %p2062_p7 = scmp.ne.s32.totalorder %s2054_s23, 0 }
  0x80   : > { %1279 = vmatpush3.bf16.msra.mxu0 %v1425_v2  ;;  %v368_v17 = vpack.c.bf16 %v353_v16, %v352_v13  ;;  %v1435_v18 = vld [vmem:[#allocation7 + $0x8] sm:$0xff]   ;;  %v1437_v20 = vld [vmem:[#allocation7] sm:$0xff]   ;;  %v331_v23 = vld [vmem:[%s1878_s30 + $0x18] sm:$0xff] }
  0x81   : > { %1311 = vmatpush3.bf16.msra.mxu1 %v1426_v3  ;;  %1280 = vmatprep.subr.bf16.mxu0 %v1427_v4  ;;  %v1436_v19 = vld [vmem:[#allocation8 + $0x8] sm:$0xff]   ;;  %v1438_v21 = vld [vmem:[#allocation8] sm:$0xff]   ;;  %v354_v24 = vld [vmem:[%s1885_s11 + $0x10] sm:$0xff]  ;;  %v345_v30 = vpack.c.bf16 %v331_v23, %v330_v22  ;;  %p1549_p9 = pnand %p1548_p12, %p2062_p7 }
  0x82   : > { %1312 = vmatprep.subr.bf16.mxu1 %v1428_v5  ;;  %1292 = vmatprep.mubr.bf16.mxu0 %v344_v15  ;;  %v355_v25 = vld [vmem:[%s1885_s11 + $0x18] sm:$0xff]  ;;  %v332_v26 = vld [vmem:[%s1878_s30 + $0x20] sm:$0xff]  ;;  %v333_v27 = vld [vmem:[%s1878_s30 + $0x28] sm:$0xff] }
  0x83   : > { %1324 = vmatprep.mubr.bf16.mxu1 %v368_v17  ;;  %v356_v28 = vld [vmem:[%s1885_s11 + $0x20] sm:$0xff]  ;;  %v357_v29 = vld [vmem:[%s1885_s11 + $0x28] sm:$0xff]  ;;  %v369_v31 = vpack.c.bf16 %v355_v25, %v354_v24  ;;  %v346_v32 = vpack.c.bf16 %v333_v27, %v332_v26  ;;  %v334_v34 = vld [vmem:[%s1878_s30 + $0x30] sm:$0xff]  ;;  %p1550_p13 = pneg %p1549_p9 }
  0x84   : > { %1281 = vmatpush3.bf16.msra.mxu0 %v1427_v4  ;;  %v370_v33 = vpack.c.bf16 %v357_v29, %v356_v28  ;;  %v335_v35 = vld [vmem:[%s1878_s30 + $0x38] sm:$0xff]  ;;  %v358_v36 = vld [vmem:[%s1885_s11 + $0x30] sm:$0xff]  ;;  %v336_v38 = vld [vmem:[%s1878_s30 + $0x40] sm:$0xff] }
  0x85   : > { %1313 = vmatpush3.bf16.msra.mxu1 %v1428_v5  ;;  %1282 = vmatprep.subr.bf16.mxu0 %v1429_v6  ;;  %v359_v37 = vld [vmem:[%s1885_s11 + $0x38] sm:$0xff]  ;;  %v337_v39 = vld [vmem:[%s1878_s30 + $0x48] sm:$0xff]  ;;  %v360_v40 = vld [vmem:[%s1885_s11 + $0x40] sm:$0xff]  ;;  %v347_v42 = vpack.c.bf16 %v335_v35, %v334_v34 }
  0x86   : > { %1314 = vmatprep.subr.bf16.mxu1 %v1430_v7  ;;  %v361_v41 = vld [vmem:[%s1885_s11 + $0x48] sm:$0xff]  ;;  %v371_v43 = vpack.c.bf16 %v359_v37, %v358_v36  ;;  %v348_v44 = vpack.c.bf16 %v337_v39, %v336_v38  ;;  %v338_v46 = vld [vmem:[%s1878_s30 + $0x50] sm:$0xff]  ;;  %v339_v47 = vld [vmem:[%s1878_s30 + $0x58] sm:$0xff] }
  0x87   : > { %v372_v45 = vpack.c.bf16 %v361_v41, %v360_v40  ;;  %v362_v48 = vld [vmem:[%s1885_s11 + $0x50] sm:$0xff]  ;;  %v363_v49 = vld [vmem:[%s1885_s11 + $0x58] sm:$0xff]  ;;  %v340_v50 = vld [vmem:[%s1878_s30 + $0x60] sm:$0xff]  ;;  %v349_v54 = vpack.c.bf16 %v339_v47, %v338_v46 }
  0x88   : > { %1283 = vmatpush3.bf16.msra.mxu0 %v1429_v6  ;;  %v341_v51 = vld [vmem:[%s1878_s30 + $0x68] sm:$0xff]  ;;  %v364_v52 = vld [vmem:[%s1885_s11 + $0x60] sm:$0xff]  ;;  %v373_v55 = vpack.c.bf16 %v363_v49, %v362_v48  ;;  %v342_v58 = vld [vmem:[%s1878_s30 + $0x70] sm:$0xff] }
  0x89   : > { %1315 = vmatpush3.bf16.msra.mxu1 %v1430_v7  ;;  %1284 = vmatprep.subr.bf16.mxu0 %v1431_v8  ;;  %v365_v53 = vld [vmem:[%s1885_s11 + $0x68] sm:$0xff]  ;;  %v350_v56 = vpack.c.bf16 %v341_v51, %v340_v50  ;;  %v343_v59 = vld [vmem:[%s1878_s30 + $0x78] sm:$0xff]  ;;  %v366_v60 = vld [vmem:[%s1885_s11 + $0x70] sm:$0xff]  ;;  %s1663_s30 = smov [#allocation10]  }
  0x8a   : > { %1316 = vmatprep.subr.bf16.mxu1 %v1432_v9  ;;  %v374_v57 = vpack.c.bf16 %v365_v53, %v364_v52  ;;  %v367_v61 = vld [vmem:[%s1885_s11 + $0x78] sm:$0xff]  ;;  %v351_v62 = vpack.c.bf16 %v343_v59, %v342_v58  ;;  %s1551_s0 = sshll.u32 %s1663_s30, 4  ;;  %s1552_s0 = int_to_ptr.vmem [resolvable:$false] %s1551_s0 }
  0x8b   : > { %v375_v63 = vpack.c.bf16 %v367_v61, %v366_v60  ;;  %s1553_s26 = scalar_lea.vmem %s1552_s0, 2048  ;;  %p1554_p5 = scmp.lt.s32.totalorder %s1951_s28, %s1552_s0 }
  0x8c   : > { %1285 = vmatpush3.bf16.msra.mxu0 %v1431_v8  ;;  %p1555_p1 = scmp.lt.s32.totalorder %s1553_s26, %s1547_s10 }
  0x8d   : > { %1317 = vmatpush3.bf16.msra.mxu1 %v1432_v9  ;;  %1286 = vmatprep.subr.bf16.mxu0 %v1433_v10 }
  0x8e   : > { %1318 = vmatprep.subr.bf16.mxu1 %v1434_v14  ;;  %p1556_p4 = por %p1555_p1, %p1554_p5 }
  0x90   : > { %1287 = vmatpush3.bf16.msra.mxu0 %v1433_v10  ;;  %p1557_p3 = pnand %p1556_p4, %p1550_p13 }
  0x91   : > { %1319 = vmatpush3.bf16.msra.mxu1 %v1434_v14  ;;  %1288 = vmatprep.subr.bf16.mxu0 %v1435_v18 }
  0x92   : > { %1320 = vmatprep.subr.bf16.mxu1 %v1436_v19 }
  0x94   : > { %1289 = vmatpush3.bf16.msra.mxu0 %v1435_v18 }
  0x95   : > { %1321 = vmatpush3.bf16.msra.mxu1 %v1436_v19  ;;  %1290 = vmatprep.subr.bf16.mxu0 %v1437_v20 }
  0x96   : > { %1322 = vmatprep.subr.bf16.mxu1 %v1438_v21 }
  0x98   : > { %1291 = vmatpush3.bf16.msra.mxu0 %v1437_v20 }
  0x99   : > { %1323 = vmatpush3.bf16.msra.mxu1 %v1438_v21 }
  0x9b   : > { %1293 = vmatmul.mubr.bf16.vlgmr.msra.gmra.mxu0 %v345_v30 }
  0x9c   : > { %1325 = vmatmul.mubr.bf16.vlgmr.msra.gmra.mxu1 %v369_v31  ;;  %1296 = vmatprep.mubr.bf16.mxu0 %v346_v32 }
  0x9d   : > { %1328 = vmatprep.mubr.bf16.mxu1 %v370_v33 }
  0xa3   : > { %1297 = vmatmul.mubr.bf16.gmra.mxu0 %v347_v42 }
  0xa4   : > { %1329 = vmatmul.mubr.bf16.gmra.mxu1 %v371_v43  ;;  %1300 = vmatprep.mubr.bf16.mxu0 %v348_v44 }
  0xa5   : > { %1332 = vmatprep.mubr.bf16.mxu1 %v372_v45 }
  0xab   : > { %1301 = vmatmul.mubr.bf16.gmra.mxu0 %v349_v54 }
  0xac   : > { %1333 = vmatmul.mubr.bf16.gmra.mxu1 %v373_v55  ;;  %1304 = vmatprep.mubr.bf16.mxu0 %v350_v56 }
  0xad   : > { %1336 = vmatprep.mubr.bf16.mxu1 %v374_v57 }
  0xb3   : > { %1305 = vmatmul.mubr.bf16.gmra.mxu0 %v351_v62 }
  0xb4   : > { %1337 = vmatmul.mubr.bf16.gmra.mxu1 %v375_v63 }
 0x15b   : > { %v1294_v0 = vpop.f32.mrf.mxu0 }
 0x15c   : > { %v1326_v1 = vpop.f32.mrf.mxu1 }
 0x15d   : > { %v474_v2 = vpop.f32.mrf.mxu0 }
 0x15e   : > { %v715_v3 = vpop.f32.mrf.mxu1 }
 0x15f   : > { %v1295_v4 = vpop.f32.mrf.mxu0 }
 0x160   : > { %v1158_v5 = vpack.c.bf16 %v1295_v4, %v1294_v0  ;;  %v1327_v6 = vpop.f32.mrf.mxu1 }
 0x161   : > { %v1198_v7 = vpack.c.bf16 %v1327_v6, %v1326_v1  ;;  %v477_v8 = vpop.f32.mrf.mxu0 }
 0x162   : > { %1230 = vst [vmem:[%s1932_s13 + $0x8] sm:$0xff] %v1158_v5   ;;  %v1153_v9 = vpack.c.bf16 %v477_v8, %v474_v2  ;;  %v718_v10 = vpop.f32.mrf.mxu1 }
 0x163   : > { %1237 = vst [vmem:[%s1935_s17 + $0x8] sm:$0xff] %v1198_v7   ;;  %v1193_v11 = vpack.c.bf16 %v718_v10, %v715_v3  ;;  %v1298_v12 = vpop.f32.mrf.mxu0 }
 0x164   : > { %1154 = vst [vmem:[%s1932_s13] sm:$0xff] %v1153_v9   ;;  %v1330_v13 = vpop.f32.mrf.mxu1 }
 0x165   : > { %1194 = vst [vmem:[%s1935_s17] sm:$0xff] %v1193_v11   ;;  %v490_v14 = vpop.f32.mrf.mxu0 }
 0x166   : > { %v731_v15 = vpop.f32.mrf.mxu1 }
 0x167   : > { %v1299_v16 = vpop.f32.mrf.mxu0 }
 0x168   : > { %v1168_v17 = vpack.c.bf16 %v1299_v16, %v1298_v12  ;;  %v1331_v18 = vpop.f32.mrf.mxu1 }
 0x169   : > { %v1208_v19 = vpack.c.bf16 %v1331_v18, %v1330_v13  ;;  %v493_v20 = vpop.f32.mrf.mxu0 }
 0x16a   : > { %1232 = vst [vmem:[%s1932_s13 + $0x18] sm:$0xff] %v1168_v17   ;;  %v1163_v21 = vpack.c.bf16 %v493_v20, %v490_v14  ;;  %v734_v22 = vpop.f32.mrf.mxu1 }
 0x16b   : > { %1239 = vst [vmem:[%s1935_s17 + $0x18] sm:$0xff] %v1208_v19   ;;  %v1203_v23 = vpack.c.bf16 %v734_v22, %v731_v15  ;;  %v1302_v24 = vpop.f32.mrf.mxu0 }
 0x16c   : > { %1231 = vst [vmem:[%s1932_s13 + $0x10] sm:$0xff] %v1163_v21   ;;  %v1334_v25 = vpop.f32.mrf.mxu1 }
 0x16d   : > { %1238 = vst [vmem:[%s1935_s17 + $0x10] sm:$0xff] %v1203_v23   ;;  %v506_v26 = vpop.f32.mrf.mxu0 }
 0x16e   : > { %v747_v27 = vpop.f32.mrf.mxu1 }
 0x16f   : > { %v1303_v28 = vpop.f32.mrf.mxu0 }
 0x170   : > { %v1178_v29 = vpack.c.bf16 %v1303_v28, %v1302_v24  ;;  %v1335_v30 = vpop.f32.mrf.mxu1 }
 0x171   : > { %v1218_v31 = vpack.c.bf16 %v1335_v30, %v1334_v25  ;;  %v509_v32 = vpop.f32.mrf.mxu0 }
 0x172   : > { %1234 = vst [vmem:[%s1932_s13 + $0x28] sm:$0xff] %v1178_v29   ;;  %v1173_v33 = vpack.c.bf16 %v509_v32, %v506_v26  ;;  %v750_v34 = vpop.f32.mrf.mxu1 }
 0x173   : > { %1241 = vst [vmem:[%s1935_s17 + $0x28] sm:$0xff] %v1218_v31   ;;  %v1213_v35 = vpack.c.bf16 %v750_v34, %v747_v27  ;;  %v1306_v36 = vpop.f32.mrf.mxu0 }
 0x174   : > { %1233 = vst [vmem:[%s1932_s13 + $0x20] sm:$0xff] %v1173_v33   ;;  %v1338_v37 = vpop.f32.mrf.mxu1 }
 0x175   : > { %1240 = vst [vmem:[%s1935_s17 + $0x20] sm:$0xff] %v1213_v35   ;;  %v522_v38 = vpop.f32.mrf.mxu0 }
 0x176   : > { %v763_v39 = vpop.f32.mrf.mxu1 }
 0x177   : > { %v1307_v40 = vpop.f32.mrf.mxu0 }
 0x178   : > { %v1188_v41 = vpack.c.bf16 %v1307_v40, %v1306_v36  ;;  %v1339_v42 = vpop.f32.mrf.mxu1 }
 0x179   : > { %v1228_v43 = vpack.c.bf16 %v1339_v42, %v1338_v37  ;;  %v525_v44 = vpop.f32.mrf.mxu0 }
 0x17a   : > { %1236 = vst [vmem:[%s1932_s13 + $0x38] sm:$0xff] %v1188_v41   ;;  %v1183_v45 = vpack.c.bf16 %v525_v44, %v522_v38  ;;  %v766_v46 = vpop.f32.mrf.mxu1 }
 0x17b   : > { %1243 = vst [vmem:[%s1935_s17 + $0x38] sm:$0xff] %v1228_v43   ;;  %v1223_v47 = vpack.c.bf16 %v766_v46, %v763_v39 }
 0x17c   : > { %1235 = vst [vmem:[%s1932_s13 + $0x30] sm:$0xff] %v1183_v45  }
 0x17d   : > { %1242 = vst [vmem:[%s1935_s17 + $0x30] sm:$0xff] %v1223_v47  }
 0x17e   : > { %1560 = shalt.err (!%p1557_p3)
}
 0x17f   : > { %s1561_s11 = scalar_lea.hbm %s1958_s7, 1024  ;;  %s1565_s17 = scalar_lea.hbm %s2041_s4, 2048 }
 0x180   : > { %p1562_p2 = scmp.ne.s32.totalorder %s1958_s7, %s1561_s11  ;;  %p1566_p11 = scmp.lt.s32.totalorder %s1958_s7, %s2041_s4 }
 0x181   : > { %p1567_p10 = scmp.lt.s32.totalorder %s1565_s17, %s1561_s11 }
 0x182   : > { %p1563_p0 = pnand %p1562_p2, %p2062_p7 }
 0x183   : > { %p1568_p6 = por %p1567_p10, %p1566_p11 }
 0x184   : > { %p1564_p8 = pneg %p1563_p0 }
 0x186   : > { %p1569_p12 = pnand %p1568_p6, %p1564_p8 }
 0x188   : > { %1572 = shalt.err (!%p1569_p12)
}
 0x189   : > { %s1664_s29 = smov 64   ;;  %s1665_s22 = smov 4  }
 0x18a   : > { %1352 = dma.vmem_to_hbm [thread:$0]  (%p2062_p7), %s1951_s28, 1024, %s1958_s7, %s859_s8, %s1664_s29, %s1664_s29, %s1665_s22  }
 0x18b   : > { %s864_s9 = scalar_lea.sflag [#allocation12], %s1874_s2  ;;  %s1573_s10 = scalar_lea.vmem %s1953_s14, 1024 }
 0x18c   : > { %p1574_p9 = scmp.ne.s32.totalorder %s1953_s14, %s1573_s10  ;;  %s1666_s30 = smov [#allocation11]  }
 0x18d   : > { %s1577_s0 = sshll.u32 %s1666_s30, 4  ;;  %s1578_s0 = int_to_ptr.vmem [resolvable:$false] %s1577_s0 }
 0x18e   : > { %p1575_p13 = pnand %p1574_p9, %p2062_p7  ;;  %s1579_s26 = scalar_lea.vmem %s1578_s0, 2048 }
 0x18f   : > { %p1580_p1 = scmp.lt.s32.totalorder %s1953_s14, %s1578_s0  ;;  %p1581_p4 = scmp.lt.s32.totalorder %s1579_s26, %s1573_s10 }
 0x190   : > { %p1576_p5 = pneg %p1575_p13 }
 0x191   : > { %p1582_p3 = por %p1581_p4, %p1580_p1 }
 0x193   : > { %p1583_p2 = pnand %p1582_p3, %p1576_p5 }
 0x195   : > { %1586 = shalt.err (!%p1583_p2)
}
 0x196   : > { %s1587_s28 = scalar_lea.hbm %s1965_s16, 1024  ;;  %s1591_s8 = scalar_lea.hbm %s2042_s5, 2048 }
 0x197   : > { %p1588_p0 = scmp.ne.s32.totalorder %s1965_s16, %s1587_s28  ;;  %p1592_p10 = scmp.lt.s32.totalorder %s1965_s16, %s2042_s5 }
 0x198   : > { %p1593_p6 = scmp.lt.s32.totalorder %s1591_s8, %s1587_s28 }
 0x199   : > { %p1589_p8 = pnand %p1588_p0, %p2062_p7 }
 0x19a   : > { %p1594_p12 = por %p1593_p6, %p1592_p10 }
 0x19b   : > { %p1590_p11 = pneg %p1589_p8 }
 0x19d   : > { %p1595_p9 = pnand %p1594_p12, %p1590_p11 }
 0x19f   : > { %1598 = shalt.err (!%p1595_p9)
}
 0x1a0   : > { %1353 = dma.vmem_to_hbm [thread:$0]  (%p2062_p7), %s1953_s14, 1024, %s1965_s16, %s864_s9, %s1664_s29, %s1664_s29, %s1665_s22  }
 0x1a1 PF: > { %s908_s13 = sand.u32 1, %s1641_s18   ;;  %p2063_p13 = scmp.ne.s32.totalorder %s2049_s25, 0 }
 0x1a2   : > { %p2064_p5 = scmp.ge.s32.totalorder %s1653_s21, 2  ;;  %s909_s17 = scalar_lea.sflag [#allocation4], %s908_s13 }
 0x1a4   : > { %p1371_p1 = pnand %p2064_p5, %p2063_p13 }
 0x1a6   : > { %p1372_p4 = pneg %p1371_p1 }
 0x1a8   : > { %1632 = dma.done.wait (%p1372_p4), %s909_s17, 1024  }
 0x1a9   : > { %1634 = vsyncadd (%p1372_p4), %s909_s17, 4294966272  ;;  %s918_s12 = scalar_lea.sflag [#allocation12], %s908_s13 }
 0x1aa   : > { %1636 = dma.done.wait (%p1372_p4), %s918_s12, 1024  }
 0x1ab   : > { %1638 = vsyncadd (%p1372_p4), %s918_s12, 4294966272  ;;  %p26_p7 = scmp.ge.s32.totalorder %s1769_s15, 4   ;;  %s2065_s18 = smov %s1645_s19 }
 0x1ac   : > { %s2066_s19 = smov %s1649_s20  ;;  %s2067_s20 = smov %s1785_s27 }
 0x1ad   : > { %s2068_s21 = smov %s1769_s15  ;;  %28 = sbr.rel (!%p26_p7) target bundleno = 13 (0xd), region = 119 }
 0x1b2   :  { %923 = vsyncpa [#allocation3], 1 }
 0x1b3   :  { %925 = vsyncpa [#allocation3 + $0x1], 1 }
 0x1b4   :  { %926 = vsyncpa [#allocation6], 1 }
 0x1b5   :  { %928 = vsyncpa [#allocation6 + $0x1], 1 }
 0x1b6   :  { %929 = vsyncpa [#allocation9], 1 }
 0x1b7   :  { %930 = vsyncpa [#allocation4], 1 }
 0x1b8   :  { %932 = vsyncpa [#allocation4 + $0x1], 1 }
 0x1b9   :  { %933 = vsyncpa [#allocation12], 1 }
 0x1ba   :  { %935 = vsyncpa [#allocation12 + $0x1], 1 }

</bundles_post_ra>
